<compile_context>
chip_gen: v7x
topology: tpu7x:2x2x1
jax: 0.10.0
libtpu: 0.0.40
codegen_flags: <defaults>
</compile_context>

<pallas_src>
import functools

import jax
import jax.numpy as jnp
from jax import lax
from jax.experimental import pallas as pl
from jax.experimental.pallas import tpu as pltpu

EPS = 1e-5
_TARGET_BLOCK_BYTES = 2 * 1024 * 1024   # ~2 MiB input block; x4 when in+out double-buffered
_VMEM_LIMIT_BYTES = 32 * 1024 * 1024    # explicit scoped-VMEM budget, safe on v5e/v6e/v7x


def _choose_row_tile(total_rows: int, padded_row_bytes: int) -> int:
    """Sublane (row) tile: multiple of 8 sized to ~_TARGET_BLOCK_BYTES, or full extent."""
    rows = _TARGET_BLOCK_BYTES // max(padded_row_bytes, 1)
    rows = max(8, (rows // 8) * 8)
    if rows >= total_rows:
        return total_rows          # single block == full extent (always a legal block)
    return rows


def _stats_kernel(x_ref, sums_ref, *, total_rows: int, row_tile: int):
    """Accumulate per-lane sum (row 0) and sum-of-squares (row 1) across row tiles."""
    i = pl.program_id(0)

    @pl.when(i == 0)
    def _():
        sums_ref[...] = jnp.zeros_like(sums_ref)

    x = x_ref[...].astype(jnp.float32)
    if total_rows % row_tile != 0:
        # Mask rows of the final (padded) block that lie past the true extent.
        row_ids = lax.broadcasted_iota(jnp.int32, x.shape, 0) + i * row_tile
        x = jnp.where(row_ids < total_rows, x, 0.0)

    sums_ref[0:1, :] = sums_ref[0:1, :] + jnp.sum(x, axis=0, keepdims=True)
    sums_ref[1:2, :] = sums_ref[1:2, :] + jnp.sum(x * x, axis=0, keepdims=True)


def _normalize_kernel(scale_ref, shift_ref, x_ref, o_ref):
    """out = x * scale + shift with per-channel scale/shift broadcast along lanes."""
    x = x_ref[...].astype(jnp.float32)
    o_ref[...] = (x * scale_ref[...] + shift_ref[...]).astype(o_ref.dtype)


def spectrogram_norm(inputs, gamma, beta):
    """inputs: (T, N, bands, C, freq). gamma/beta: (bands*C,). Returns same shape as inputs."""
    T, N, bands, C, freq = inputs.shape
    CH = bands * C
    CHF = CH * freq
    TN = T * N

    # Pure reshape (collapses contiguous axes) — no HBM transpose passes.
    x2 = inputs.reshape(TN, CHF)

    lane_padded = pl.cdiv(CHF, 128) * 128
    row_tile = _choose_row_tile(TN, lane_padded * 4)
    n_tiles = pl.cdiv(TN, row_tile)

    # ---- Pass 1: fused per-lane sum / sum-of-squares (streamed reduction). ----
    sums = pl.pallas_call(
        functools.partial(_stats_kernel, total_rows=TN, row_tile=row_tile),
        out_shape=jax.ShapeDtypeStruct((2, CHF), jnp.float32),
        grid_spec=pltpu.PrefetchScalarGridSpec(
            num_scalar_prefetch=0,
            grid=(n_tiles,),
            in_specs=[pl.BlockSpec((row_tile, CHF), lambda i: (i, 0))],
            out_specs=pl.BlockSpec((2, CHF), lambda i: (0, 0)),   # VMEM-resident accumulator
        ),
        compiler_params=pltpu.CompilerParams(
            dimension_semantics=("arbitrary",),
            vmem_limit_bytes=_VMEM_LIMIT_BYTES,
        ),
    )(x2)

    # ---- Tiny glue on (CH*freq,) / (CH,) vectors in plain JAX. ----
    count = jnp.float32(TN * freq)                              # elements per channel
    s = jnp.sum(sums[0].reshape(CH, freq), axis=-1)
    s2 = jnp.sum(sums[1].reshape(CH, freq), axis=-1)
    mean = s / count
    var = jnp.maximum(s2 / count - mean * mean, 0.0)            # biased variance (clamped)
    scale_c = gamma.astype(jnp.float32) * lax.rsqrt(var + EPS)
    shift_c = beta.astype(jnp.float32) - mean * scale_c
    scale = jnp.repeat(scale_c, freq)[None, :]                  # (1, CH*freq)
    shift = jnp.repeat(shift_c, freq)[None, :]                  # (1, CH*freq)

    # ---- Pass 2: elementwise normalize, lane-dense, parallel over row tiles. ----
    out2 = pl.pallas_call(
        _normalize_kernel,
        out_shape=jax.ShapeDtypeStruct((TN, CHF), inputs.dtype),
        grid_spec=pltpu.PrefetchScalarGridSpec(
            num_scalar_prefetch=0,
            grid=(n_tiles,),
            in_specs=[
                pl.BlockSpec((1, CHF), lambda i: (0, 0)),       # scale (constant block)
                pl.BlockSpec((1, CHF), lambda i: (0, 0)),       # shift (constant block)
                pl.BlockSpec((row_tile, CHF), lambda i: (i, 0)),
            ],
            out_specs=pl.BlockSpec((row_tile, CHF), lambda i: (i, 0)),
        ),
        compiler_params=pltpu.CompilerParams(
            dimension_semantics=("parallel",),                  # independent tiles -> 2 TCs on v7x
            vmem_limit_bytes=_VMEM_LIMIT_BYTES,
        ),
    )(scale, shift, x2)

    # Pure reshape back to the original logical layout — no transpose.
    return out2.reshape(T, N, bands, C, freq)


def _reference(inputs, gamma, beta):
    T, N, bands, C, freq = inputs.shape
    CH = bands * C
    x = jnp.moveaxis(inputs, 0, -1).reshape(N, CH, freq, T)
    mean = jnp.mean(x, axis=(0, 2, 3), keepdims=True)
    var = jnp.var(x, axis=(0, 2, 3), keepdims=True)  # biased
    xn = (x - mean) / jnp.sqrt(var + EPS)
    xn = xn * gamma[None, :, None, None] + beta[None, :, None, None]
    xn = xn.reshape(N, bands, C, freq, T)
    return jnp.moveaxis(xn, -1, 0)


if __name__ == "__main__":
    # Small shapes consistent with the module: T=8, N=2, bands=2, C=4, freq=16.
    T, N, bands, C, freq = 8, 2, 2, 4, 16
    CH = bands * C

    key = jax.random.PRNGKey(0)
    inputs = jax.random.normal(key, (T, N, bands, C, freq), dtype=jnp.float32)

    # Deterministic synthetic BatchNorm affine parameters (defaults weight=1, bias=0;
    # perturbed to exercise the scale/shift path).
    gamma = 1.0 + 0.05 * jnp.arange(CH, dtype=jnp.float32)
    beta = 0.1 * jnp.arange(CH, dtype=jnp.float32) - 0.2

    out = spectrogram_norm(inputs, gamma, beta)
    out = jax.block_until_ready(out)

    ref = _reference(inputs, gamma, beta)
    assert out.shape == (T, N, bands, C, freq)
    assert jnp.allclose(out, ref, atol=1e-4, rtol=1e-4), "mismatch vs reference"

    print("KERNEL_OK")
</pallas_src>

<mosaic_0001>
module attributes {stable_mosaic.version = 11 : i64} {
  func.func @_stats_kernel(%arg0: i32, %arg1: memref<16x128xf32, #tpu.memory_space<vmem>>, %arg2: memref<2x128xf32, #tpu.memory_space<vmem>>) attributes {dimension_semantics = [#tpu.dimension_semantics<arbitrary>], iteration_bounds = array<i64: 1>, scalar_prefetch = 0 : i64, scratch_operands = 0 : i64, tpu.core_type = #tpu.core_type<tc>, window_params = [{transform_indices = @transform_0, window_bounds = array<i64: 16, 128>}, {pipeline_mode = #tpu.pipeline_mode<synchronous>, transform_indices = @transform_1, window_bounds = array<i64: 2, 128>}]} {
    %c0_i32 = arith.constant 0 : i32
    %0 = arith.cmpi eq, %arg0, %c0_i32 : i32
    %1 = arith.extui %0 : i1 to i32
    %c0_i32_0 = arith.constant 0 : i32
    %2 = arith.cmpi ne, %1, %c0_i32_0 : i32
    scf.if %2 {
      %cst_10 = arith.constant 0.000000e+00 : f32
      %15 = vector.broadcast %cst_10 : f32 to vector<2x128xf32>
      %c0_11 = arith.constant 0 : index
      %c0_12 = arith.constant 0 : index
      %16 = vector.load %arg2[%c0_11, %c0_12] : memref<2x128xf32, #tpu.memory_space<vmem>>, vector<2x128xf32>
      tpu.vector_store %arg2[%c0_11, %c0_12], %15 {strides = array<i32>} : memref<2x128xf32, #tpu.memory_space<vmem>>, vector<2x128xf32>,
    } else {
    }
    %c0 = arith.constant 0 : index
    %c0_1 = arith.constant 0 : index
    %3 = vector.load %arg1[%c0, %c0_1] : memref<16x128xf32, #tpu.memory_space<vmem>>, vector<16x128xf32>
    %c0_2 = arith.constant 0 : index
    %c0_3 = arith.constant 0 : index
    %4 = vector.load %arg2[%c0_2, %c0_3] : memref<2x128xf32, #tpu.memory_space<vmem>>, vector<1x128xf32>
    %cst = arith.constant dense<0.000000e+00> : vector<128xf32>
    %5 = vector.multi_reduction <add>, %3, %cst [0] : vector<16x128xf32> to vector<128xf32>
    %6 = vector.shape_cast %5 : vector<128xf32> to vector<1x128xf32>
    %7 = arith.addf %4, %6 : vector<1x128xf32>
    %c0_4 = arith.constant 0 : index
    %c0_5 = arith.constant 0 : index
    %8 = vector.load %arg2[%c0_4, %c0_5] : memref<2x128xf32, #tpu.memory_space<vmem>>, vector<1x128xf32>
    tpu.vector_store %arg2[%c0_4, %c0_5], %7 {strides = array<i32>} : memref<2x128xf32, #tpu.memory_space<vmem>>, vector<1x128xf32>,
    %c1 = arith.constant 1 : index
    %c0_6 = arith.constant 0 : index
    %9 = vector.load %arg2[%c1, %c0_6] : memref<2x128xf32, #tpu.memory_space<vmem>>, vector<1x128xf32>
    %10 = arith.mulf %3, %3 : vector<16x128xf32>
    %cst_7 = arith.constant dense<0.000000e+00> : vector<128xf32>
    %11 = vector.multi_reduction <add>, %10, %cst_7 [0] : vector<16x128xf32> to vector<128xf32>
    %12 = vector.shape_cast %11 : vector<128xf32> to vector<1x128xf32>
    %13 = arith.addf %9, %12 : vector<1x128xf32>
    %c1_8 = arith.constant 1 : index
    %c0_9 = arith.constant 0 : index
    %14 = vector.load %arg2[%c1_8, %c0_9] : memref<2x128xf32, #tpu.memory_space<vmem>>, vector<1x128xf32>
    tpu.vector_store %arg2[%c1_8, %c0_9], %13 {strides = array<i32>} : memref<2x128xf32, #tpu.memory_space<vmem>>, vector<1x128xf32>,
    return
  }
  func.func @transform_0(%arg0: i32) -> (i32, i32) {
    %c0_i32 = arith.constant 0 : i32
    %c0_i32_0 = arith.constant 0 : i32
    return %arg0, %c0_i32 : i32, i32
  }
  func.func @transform_1(%arg0: i32) -> (i32, i32) {
    %c0_i32 = arith.constant 0 : i32
    %c0_i32_0 = arith.constant 0 : i32
    %c0_i32_1 = arith.constant 0 : i32
    return %c0_i32, %c0_i32_0 : i32, i32
  }
}

</mosaic_0001>

<bundles_post_ra>
// kernel: tpu_custom_call.1
= control target key start
LH: loop header
LB: loop body
LE: loop exit
PB: predicated region body
PF: predicated region fallthrough
CT: control target
= control target key end

     0   :  { %6 = vsyncpa [#allocation3], 0  ;;  %s159_s0 = inlined_call_operand.hbm [shape: f32[16,128], index: 0, kind: input, shape index: {}]   ;;  %s160_s1 = inlined_call_operand.hbm [shape: f32[2,128], index: 1, kind: output, shape index: {}]  }
   0x1   :  { %7 = vsyncpa [#allocation4], 0  ;;  %s120_s6 = smov [#allocation2]   ;;  %s72_s10 = scalar_lea.hbm %s159_s0, 256 }
   0x2   :  { %s13_s7 = sshll.u32 %s120_s6, 4  ;;  %p73_p0 = scmp.ne.s32.totalorder %s159_s0, %s72_s10  ;;  %s14_s7 = int_to_ptr.vmem [resolvable:$true] %s13_s7 }
   0x3   :  { %p76_p1 = scmp.lt.u32.totalorder %s72_s10, %s159_s0 }
   0x5   :  { %p78_p2 = pnand %p76_p1, %p73_p0 }
   0x7   :  { %81 = shalt.err (!%p78_p2)
}
   0x8   :  { %s82_s15 = scalar_lea.vmem %s14_s7, 256  ;;  %p87_p4 = scmp.lt.s32.totalorder %s14_s7, %s14_s7 }
   0x9   :  { %p83_p3 = scmp.ne.s32.totalorder %s14_s7, %s82_s15  ;;  %p88_p5 = scmp.lt.s32.totalorder %s82_s15, %s82_s15 }
   0xb   :  { %p89_p6 = por %p88_p5, %p87_p4 }
   0xd   :  { %p90_p7 = pnand %p89_p6, %p83_p3 }
   0xf   :  { %93 = shalt.err (!%p90_p7)
}
  0x10   :  { %s121_s16 = smov 128   ;;  %s122_s17 = smov 8  }
  0x11   :  { %19 = dma.hbm_to_vmem [thread:$0]  %s159_s0, 256, %s14_s7, [#allocation3], %s121_s16, %s121_s16, %s122_s17  }
  0x12   :  { %116 = dma.done.wait [#allocation3], 256  }
  0x13   :  { %117 = vsyncadd [#allocation3], 4294967040  ;;  %v123_v0 = vmov 0.0   ;;  %v28_v1 = vld [vmem:[#allocation2] sm:$0xff]  ;;  %v29_v2 = vld [vmem:[#allocation2 + $0x8] sm:$0xff]  ;;  %s124_s0 = smov [#allocation5]  }
  0x14   :  { %27 = vst [vmem:[#allocation5] sm:$0x3] %v123_v0  ;;  %v31_v3 = vadd.f32 %v29_v2, %v28_v1  ;;  %v41_v4 = vmul.f32 %v28_v1, %v28_v1  ;;  %v42_v5 = vmul.f32 %v29_v2, %v29_v2  ;;  %s58_s20 = sshll.u32 %s124_s0, 4  ;;  %s59_s20 = int_to_ptr.vmem [resolvable:$true] %s58_s20 }
  0x15   :  { %s94_s21 = scalar_lea.vmem %s59_s20, 32  ;;  %p99_p9 = scmp.lt.s32.totalorder %s59_s20, %s59_s20 }
  0x16   :  { %v32_v6 = vrot.slane %v31_v3, 4  ;;  %v43_v7 = vadd.f32 %v42_v5, %v41_v4  ;;  %p95_p8 = scmp.ne.s32.totalorder %s59_s20, %s94_s21  ;;  %p100_p10 = scmp.lt.s32.totalorder %s94_s21, %s94_s21 }
  0x18   :  { %v33_v8 = vadd.f32 %v32_v6, %v31_v3  ;;  %v44_v9 = vrot.slane %v43_v7, 4  ;;  %p101_p11 = por %p100_p10, %p99_p9 }
  0x1a   :  { %v34_v10 = vrot.slane %v33_v8, 2  ;;  %v45_v11 = vadd.f32 %v44_v9, %v43_v7  ;;  %p102_p12 = pnand %p101_p11, %p95_p8 }
  0x1b   :  { %v30_v16 = vld [vmem:[#allocation5] sm:$0x1]  ;;  %v40_v19 = vld [vmem:[#allocation5 + $0x1] sm:$0x1] }
  0x1c   :  { %v35_v12 = vadd.f32 %v34_v10, %v33_v8  ;;  %v46_v13 = vrot.slane %v45_v11, 2 }
  0x1e   :  { %v36_v14 = vrot.slane %v35_v12, 1  ;;  %v47_v15 = vadd.f32 %v46_v13, %v45_v11 }
  0x20   :  { %v37_v17 = vadd.f32 %v36_v14, %v35_v12  ;;  %v48_v18 = vrot.slane %v47_v15, 1 }
  0x22   :  { %v38_v20 = vadd.f32 %v37_v17, %v30_v16  ;;  %v49_v21 = vadd.f32 %v48_v18, %v47_v15 }
  0x24   :  { %39 = vst [vmem:[#allocation5] sm:$0x1] %v38_v20  ;;  %v50_v22 = vadd.f32 %v49_v21, %v40_v19 }
  0x26   :  { %51 = vst [vmem:[#allocation5 + $0x1] sm:$0x1] %v50_v22 }
  0x27   :  { %105 = shalt.err (!%p102_p12)
}
  0x28   :  { %s106_s24 = scalar_lea.hbm %s160_s1, 32 }
  0x29   :  { %p107_p13 = scmp.ne.s32.totalorder %s160_s1, %s106_s24  ;;  %p110_p0 = scmp.lt.u32.totalorder %s106_s24, %s160_s1 }
  0x2b   :  { %p112_p1 = pnand %p110_p0, %p107_p13 }
  0x2d   :  { %115 = shalt.err (!%p112_p1)
}
  0x2e   :  { %61 = dma.vmem_to_hbm [thread:$0]  %s59_s20, 32, %s160_s1, [#allocation4]  }
  0x2f   :  { %118 = dma.done.wait [#allocation4], 32  }
  0x30   :  { %119 = vsyncadd [#allocation4], 4294967264 }
  0x31   :  { %65 = vsyncpa [#allocation3], 1 }
  0x32   :  { %66 = vsyncpa [#allocation4], 1 }

</bundles_post_ra>
